<compile_context>
chip_gen: v7x
topology: tpu7x:2x2x1
jax: 0.10.0
libtpu: 0.0.40
codegen_flags: <defaults>
</compile_context>

<pallas_src>
import functools

import jax
import jax.numpy as jnp
from jax.experimental import pallas as pl
from jax.experimental.pallas import tpu as pltpu


def _round_up(x, m):
    return ((x + m - 1) // m) * m


def _mlp_kernel(n_hidden, u_ref, i_ref, *refs):
    """Fused Linear+ReLU chain, affine head and sigmoid for one batch tile.

    refs = (w0_user, w0_item, b0,
            w1, b1, ..., w_{n_hidden-1}, b_{n_hidden-1},
            w_aff_row, b_aff, out_ref)
    Weights: bf16 [in, out].  Biases: f32 [1, out].  Accumulation: f32.
    """
    out_ref = refs[-1]
    p = refs[:-1]

    # Layer 0: first Linear split over the (user, item) halves so the concat
    # never has to round-trip through HBM.
    h = (jnp.dot(u_ref[...], p[0][...], preferred_element_type=jnp.float32)
         + jnp.dot(i_ref[...], p[1][...], preferred_element_type=jnp.float32)
         + p[2][...])
    h = jnp.maximum(h, 0.0)

    # Remaining hidden layers: cast activations to bf16 only at the MXU input,
    # keep bias add / ReLU in f32 (v5e VPU has no bf16 path).
    for l in range(1, n_hidden):
        w = p[3 + 2 * (l - 1)][...]
        b = p[4 + 2 * (l - 1)][...]
        h = jnp.dot(h.astype(w.dtype), w, preferred_element_type=jnp.float32) + b
        h = jnp.maximum(h, 0.0)

    # Affine head (out_features == 1): an N=1 matmul is a nearly empty MXU
    # pass, so do it as a VPU multiply + cross-lane (XLU) reduction instead.
    w_row = p[-2][...]                       # f32 [1, layers[-1]]
    b_aff = p[-1][...]                       # f32 [1, 1]
    logits = jnp.sum(h * w_row, axis=-1, keepdims=True) + b_aff
    out_ref[...] = jax.nn.sigmoid(logits)    # [TB, 1]


def mlp_forward(user_embeds, item_embeds, hidden_weights, hidden_biases,
                aff_w, aff_b, *, batch_tile=1024):
    """user_embeds/item_embeds: [B, factor] f32.  Returns rating [B, 1] f32."""
    B, factor = user_embeds.shape
    n_hidden = len(hidden_weights)
    layer_sizes = [w.shape[1] for w in hidden_weights]

    # ---- parameter layout for the kernel (bf16 weights, f32 biases) --------
    w0 = hidden_weights[0]
    params = [
        w0[:factor].astype(jnp.bfloat16),            # W0_user  [factor, L1]
        w0[factor:].astype(jnp.bfloat16),            # W0_item  [factor, L1]
        hidden_biases[0].astype(jnp.float32),        # b0       [1, L1]
    ]
    for w, b in zip(hidden_weights[1:], hidden_biases[1:]):
        params += [w.astype(jnp.bfloat16), b.astype(jnp.float32)]
    params += [aff_w.reshape(1, -1).astype(jnp.float32),   # affine row [1, L_last]
               aff_b.reshape(1, 1).astype(jnp.float32)]    # affine bias [1, 1]

    # ---- batch tiling -------------------------------------------------------
    tb = min(batch_tile, _round_up(B, 8))    # multiple of 8 sublanes
    b_pad = _round_up(B, tb)
    pad = b_pad - B
    u = user_embeds.astype(jnp.bfloat16)     # halve the dominant HBM stream
    it = item_embeds.astype(jnp.bfloat16)
    if pad:
        u = jnp.pad(u, ((0, pad), (0, 0)))
        it = jnp.pad(it, ((0, pad), (0, 0)))
    grid = (b_pad // tb,)

    # ---- explicit VMEM budget (v7x: 64 MiB physical / 32 MiB default scoped)
    param_bytes = sum(int(p.size) * p.dtype.itemsize for p in params)
    stream_bytes = 2 * (2 * tb * factor * 2 + tb * 4)   # dbl-buffered u,i + out
    act_bytes = 2 * tb * max(layer_sizes) * 4           # f32 + bf16 activation temps
    vmem_limit = int(min(max(2 * (param_bytes + stream_bytes + act_bytes),
                             8 * 1024 * 1024),
                         32 * 1024 * 1024))

    tile_spec = pl.BlockSpec((tb, factor), lambda g: (g, 0))
    # Whole-array parameter blocks with constant index maps -> DMA'd once,
    # resident in VMEM across all batch-grid steps.
    param_specs = [pl.BlockSpec(p.shape, lambda g: (0, 0)) for p in params]

    out = pl.pallas_call(
        functools.partial(_mlp_kernel, n_hidden),
        out_shape=jax.ShapeDtypeStruct((b_pad, 1), jnp.float32),
        grid=grid,
        in_specs=[tile_spec, tile_spec] + param_specs,
        out_specs=pl.BlockSpec((tb, 1), lambda g: (g, 0)),
        compiler_params=pltpu.CompilerParams(
            dimension_semantics=("parallel",),
            vmem_limit_bytes=vmem_limit,
        ),
    )(u, it, *params)
    return out[:B]


def init_params(key, user_n, item_n, factor_num, layers):
    """Deterministic synthetic params matching the PyTorch module's shapes."""
    keys = iter(jax.random.split(key, 4 + 4 * len(layers)))

    # nn.Embedding default init: N(0, 1)
    user_table = jax.random.normal(next(keys), (user_n, factor_num), jnp.float32)
    item_table = jax.random.normal(next(keys), (item_n, factor_num), jnp.float32)

    # nn.Linear default init: U(-1/sqrt(in), 1/sqrt(in)) for weight and bias.
    # Weights stored transposed vs PyTorch as (in_features, out_features).
    hidden_weights, hidden_biases = [], []
    for in_size, out_size in zip(layers[:-1], layers[1:]):
        bound = 1.0 / jnp.sqrt(jnp.float32(in_size))
        w = jax.random.uniform(next(keys), (in_size, out_size), jnp.float32,
                               -bound, bound)
        b = jax.random.uniform(next(keys), (1, out_size), jnp.float32,
                               -bound, bound)
        hidden_weights.append(w)
        hidden_biases.append(b)

    bound = 1.0 / jnp.sqrt(jnp.float32(layers[-1]))
    aff_w = jax.random.uniform(next(keys), (layers[-1], 1), jnp.float32,
                               -bound, bound)
    aff_b = jax.random.uniform(next(keys), (1, 1), jnp.float32, -bound, bound)

    return user_table, item_table, hidden_weights, hidden_biases, aff_w, aff_b


def reference_kernel_math(u_emb, i_emb, hidden_weights, hidden_biases,
                          aff_w, aff_b):
    """Plain-JAX mirror of the kernel's bf16/f32 math (tight tolerance)."""
    factor = u_emb.shape[1]
    w0 = hidden_weights[0].astype(jnp.bfloat16)
    h = (jnp.dot(u_emb.astype(jnp.bfloat16), w0[:factor],
                 preferred_element_type=jnp.float32)
         + jnp.dot(i_emb.astype(jnp.bfloat16), w0[factor:],
                   preferred_element_type=jnp.float32)
         + hidden_biases[0])
    h = jnp.maximum(h, 0.0)
    for w, b in zip(hidden_weights[1:], hidden_biases[1:]):
        h = jnp.dot(h.astype(jnp.bfloat16), w.astype(jnp.bfloat16),
                    preferred_element_type=jnp.float32) + b
        h = jnp.maximum(h, 0.0)
    logits = jnp.sum(h * aff_w.reshape(1, -1), axis=-1, keepdims=True) + aff_b
    return jax.nn.sigmoid(logits)


def reference_module_f32(u_emb, i_emb, hidden_weights, hidden_biases,
                         aff_w, aff_b):
    """Full-f32 reference matching the PyTorch module semantics."""
    h = jnp.concatenate([u_emb, i_emb], axis=-1)
    for w, b in zip(hidden_weights, hidden_biases):
        h = jnp.maximum(h @ w + b, 0.0)
    return jax.nn.sigmoid(h @ aff_w + aff_b)


if __name__ == "__main__":
    # Small, module-consistent shapes: layers[0] must equal 2 * factor_num.
    user_n, item_n, factor_num = 32, 48, 16
    layers = [2 * factor_num, 64, 32, 16]
    batch = 8

    key = jax.random.PRNGKey(0)
    k_ids_u, k_ids_i, k_params = jax.random.split(key, 3)

    u_ids = jax.random.randint(k_ids_u, (batch,), 0, user_n, dtype=jnp.int32)
    i_ids = jax.random.randint(k_ids_i, (batch,), 0, item_n, dtype=jnp.int32)

    (user_table, item_table,
     hidden_weights, hidden_biases, aff_w, aff_b) = init_params(
        k_params, user_n, item_n, factor_num, layers)

    # Embedding lookup stays in plain JAX (glue).
    # TODO(synk): gather could be fused via PrefetchScalarGridSpec + pl.Element
    # row-indexed BlockSpecs to avoid materializing the embed rows in HBM.
    user_embeds = user_table[u_ids]                    # [B, factor_num]
    item_embeds = item_table[i_ids]                    # [B, factor_num]

    rating = mlp_forward(user_embeds, item_embeds,
                         hidden_weights, hidden_biases, aff_w, aff_b)
    rating = jax.block_until_ready(rating)

    ref_tight = reference_kernel_math(user_embeds, item_embeds,
                                      hidden_weights, hidden_biases,
                                      aff_w, aff_b)
    ref_f32 = reference_module_f32(user_embeds, item_embeds,
                                   hidden_weights, hidden_biases,
                                   aff_w, aff_b)

    assert rating.shape == (batch, 1)
    assert jnp.allclose(rating, ref_tight, atol=1e-4, rtol=1e-4)
    assert jnp.allclose(rating, ref_f32, atol=5e-2, rtol=5e-2)

    print("KERNEL_OK")
</pallas_src>

<mosaic_0001>
module attributes {stable_mosaic.version = 11 : i64} {
  func.func @_mlp_kernel(%arg0: i32, %arg1: memref<8x16xbf16, #tpu.memory_space<vmem>>, %arg2: memref<8x16xbf16, #tpu.memory_space<vmem>>, %arg3: memref<16x64xbf16, #tpu.memory_space<vmem>>, %arg4: memref<16x64xbf16, #tpu.memory_space<vmem>>, %arg5: memref<1x64xf32, #tpu.memory_space<vmem>>, %arg6: memref<64x32xbf16, #tpu.memory_space<vmem>>, %arg7: memref<1x32xf32, #tpu.memory_space<vmem>>, %arg8: memref<32x16xbf16, #tpu.memory_space<vmem>>, %arg9: memref<1x16xf32, #tpu.memory_space<vmem>>, %arg10: memref<1x16xf32, #tpu.memory_space<vmem>>, %arg11: memref<1x1xf32, #tpu.memory_space<vmem>>, %arg12: memref<8x1xf32, #tpu.memory_space<vmem>>) attributes {dimension_semantics = [#tpu.dimension_semantics<parallel>], iteration_bounds = array<i64: 1>, scalar_prefetch = 0 : i64, scratch_operands = 0 : i64, tpu.core_type = #tpu.core_type<tc>, window_params = [{transform_indices = @transform_0, window_bounds = array<i64: 8, 16>}, {transform_indices = @transform_1, window_bounds = array<i64: 8, 16>}, {pipeline_mode = #tpu.pipeline_mode<synchronous>, transform_indices = @transform_2, window_bounds = array<i64: 16, 64>}, {pipeline_mode = #tpu.pipeline_mode<synchronous>, transform_indices = @transform_3, window_bounds = array<i64: 16, 64>}, {pipeline_mode = #tpu.pipeline_mode<synchronous>, transform_indices = @transform_4, window_bounds = array<i64: 1, 64>}, {pipeline_mode = #tpu.pipeline_mode<synchronous>, transform_indices = @transform_5, window_bounds = array<i64: 64, 32>}, {pipeline_mode = #tpu.pipeline_mode<synchronous>, transform_indices = @transform_6, window_bounds = array<i64: 1, 32>}, {pipeline_mode = #tpu.pipeline_mode<synchronous>, transform_indices = @transform_7, window_bounds = array<i64: 32, 16>}, {pipeline_mode = #tpu.pipeline_mode<synchronous>, transform_indices = @transform_8, window_bounds = array<i64: 1, 16>}, {pipeline_mode = #tpu.pipeline_mode<synchronous>, transform_indices = @transform_9, window_bounds = array<i64: 1, 16>}, {pipeline_mode = #tpu.pipeline_mode<synchronous>, transform_indices = @transform_10, window_bounds = array<i64: 1, 1>}, {transform_indices = @transform_11, window_bounds = array<i64: 8, 1>}]} {
    %c0 = arith.constant 0 : index
    %c0_0 = arith.constant 0 : index
    %0 = vector.load %arg1[%c0, %c0_0] : memref<8x16xbf16, #tpu.memory_space<vmem>>, vector<8x16xbf16>
    %c0_1 = arith.constant 0 : index
    %c0_2 = arith.constant 0 : index
    %1 = vector.load %arg3[%c0_1, %c0_2] : memref<16x64xbf16, #tpu.memory_space<vmem>>, vector<16x64xbf16>
    %cst = arith.constant dense<0.000000e+00> : vector<8x64xf32>
    %2 = tpu.matmul %0, %1, %cst {dimension_numbers = #tpu.dot_dimension_numbers<[1], [0], [0], [1], [0, 0, 1, 1], [], []>} : vector<8x16xbf16>, vector<16x64xbf16>, vector<8x64xf32> -> vector<8x64xf32>
    %c0_3 = arith.constant 0 : index
    %c0_4 = arith.constant 0 : index
    %3 = vector.load %arg2[%c0_3, %c0_4] : memref<8x16xbf16, #tpu.memory_space<vmem>>, vector<8x16xbf16>
    %c0_5 = arith.constant 0 : index
    %c0_6 = arith.constant 0 : index
    %4 = vector.load %arg4[%c0_5, %c0_6] : memref<16x64xbf16, #tpu.memory_space<vmem>>, vector<16x64xbf16>
    %cst_7 = arith.constant dense<0.000000e+00> : vector<8x64xf32>
    %5 = tpu.matmul %3, %4, %cst_7 {dimension_numbers = #tpu.dot_dimension_numbers<[1], [0], [0], [1], [0, 0, 1, 1], [], []>} : vector<8x16xbf16>, vector<16x64xbf16>, vector<8x64xf32> -> vector<8x64xf32>
    %6 = arith.addf %2, %5 : vector<8x64xf32>
    %c0_8 = arith.constant 0 : index
    %c0_9 = arith.constant 0 : index
    %7 = vector.load %arg5[%c0_8, %c0_9] : memref<1x64xf32, #tpu.memory_space<vmem>>, vector<1x64xf32>
    %8 = vector.broadcast %7 : vector<1x64xf32> to vector<8x64xf32>
    %9 = arith.addf %6, %8 : vector<8x64xf32>
    %cst_10 = arith.constant 0.000000e+00 : f32
    %10 = vector.broadcast %cst_10 : f32 to vector<8x64xf32>
    %11 = arith.maximumf %9, %10 : vector<8x64xf32>
    %c0_11 = arith.constant 0 : index
    %c0_12 = arith.constant 0 : index
    %12 = vector.load %arg6[%c0_11, %c0_12] : memref<64x32xbf16, #tpu.memory_space<vmem>>, vector<64x32xbf16>
    %c0_13 = arith.constant 0 : index
    %c0_14 = arith.constant 0 : index
    %13 = vector.load %arg7[%c0_13, %c0_14] : memref<1x32xf32, #tpu.memory_space<vmem>>, vector<1x32xf32>
    %14 = arith.truncf %11 : vector<8x64xf32> to vector<8x64xbf16>
    %cst_15 = arith.constant dense<0.000000e+00> : vector<8x32xf32>
    %15 = tpu.matmul %14, %12, %cst_15 {dimension_numbers = #tpu.dot_dimension_numbers<[1], [0], [0], [1], [0, 0, 1, 1], [], []>} : vector<8x64xbf16>, vector<64x32xbf16>, vector<8x32xf32> -> vector<8x32xf32>
    %16 = vector.broadcast %13 : vector<1x32xf32> to vector<8x32xf32>
    %17 = arith.addf %15, %16 : vector<8x32xf32>
    %cst_16 = arith.constant 0.000000e+00 : f32
    %18 = vector.broadcast %cst_16 : f32 to vector<8x32xf32>
    %19 = arith.maximumf %17, %18 : vector<8x32xf32>
    %c0_17 = arith.constant 0 : index
    %c0_18 = arith.constant 0 : index
    %20 = vector.load %arg8[%c0_17, %c0_18] : memref<32x16xbf16, #tpu.memory_space<vmem>>, vector<32x16xbf16>
    %c0_19 = arith.constant 0 : index
    %c0_20 = arith.constant 0 : index
    %21 = vector.load %arg9[%c0_19, %c0_20] : memref<1x16xf32, #tpu.memory_space<vmem>>, vector<1x16xf32>
    %22 = arith.truncf %19 : vector<8x32xf32> to vector<8x32xbf16>
    %cst_21 = arith.constant dense<0.000000e+00> : vector<8x16xf32>
    %23 = tpu.matmul %22, %20, %cst_21 {dimension_numbers = #tpu.dot_dimension_numbers<[1], [0], [0], [1], [0, 0, 1, 1], [], []>} : vector<8x32xbf16>, vector<32x16xbf16>, vector<8x16xf32> -> vector<8x16xf32>
    %24 = vector.broadcast %21 : vector<1x16xf32> to vector<8x16xf32>
    %25 = arith.addf %23, %24 : vector<8x16xf32>
    %cst_22 = arith.constant 0.000000e+00 : f32
    %26 = vector.broadcast %cst_22 : f32 to vector<8x16xf32>
    %27 = arith.maximumf %25, %26 : vector<8x16xf32>
    %c0_23 = arith.constant 0 : index
    %c0_24 = arith.constant 0 : index
    %28 = vector.load %arg10[%c0_23, %c0_24] : memref<1x16xf32, #tpu.memory_space<vmem>>, vector<1x16xf32>
    %c0_25 = arith.constant 0 : index
    %c0_26 = arith.constant 0 : index
    %29 = vector.load %arg11[%c0_25, %c0_26] : memref<1x1xf32, #tpu.memory_space<vmem>>, vector<1x1xf32>
    %30 = vector.broadcast %28 : vector<1x16xf32> to vector<8x16xf32>
    %31 = arith.mulf %27, %30 : vector<8x16xf32>
    %cst_27 = arith.constant dense<0.000000e+00> : vector<8xf32>
    %32 = vector.multi_reduction <add>, %31, %cst_27 [1] : vector<8x16xf32> to vector<8xf32>
    %33 = vector.shape_cast %32 : vector<8xf32> to vector<8x1xf32>
    %34 = vector.broadcast %29 : vector<1x1xf32> to vector<8x1xf32>
    %35 = arith.addf %33, %34 : vector<8x1xf32>
    %36 = arith.negf %35 : vector<8x1xf32>
    %37 = math.exp %36 : vector<8x1xf32>
    %cst_28 = arith.constant 1.000000e+00 : f32
    %38 = vector.broadcast %cst_28 : f32 to vector<8x1xf32>
    %39 = arith.addf %38, %37 : vector<8x1xf32>
    %40 = arith.divf %38, %39 : vector<8x1xf32>
    %c0_29 = arith.constant 0 : index
    %c0_30 = arith.constant 0 : index
    %41 = vector.load %arg12[%c0_29, %c0_30] : memref<8x1xf32, #tpu.memory_space<vmem>>, vector<8x1xf32>
    tpu.vector_store %arg12[%c0_29, %c0_30], %40 {strides = array<i32>} : memref<8x1xf32, #tpu.memory_space<vmem>>, vector<8x1xf32>,
    return
  }
  func.func @transform_0(%arg0: i32) -> (i32, i32) {
    %c0_i32 = arith.constant 0 : i32
    %c0_i32_0 = arith.constant 0 : i32
    return %arg0, %c0_i32 : i32, i32
  }
  func.func @transform_1(%arg0: i32) -> (i32, i32) {
    %c0_i32 = arith.constant 0 : i32
    %c0_i32_0 = arith.constant 0 : i32
    return %arg0, %c0_i32 : i32, i32
  }
  func.func @transform_2(%arg0: i32) -> (i32, i32) {
    %c0_i32 = arith.constant 0 : i32
    %c0_i32_0 = arith.constant 0 : i32
    %c0_i32_1 = arith.constant 0 : i32
    return %c0_i32, %c0_i32_0 : i32, i32
  }
  func.func @transform_3(%arg0: i32) -> (i32, i32) {
    %c0_i32 = arith.constant 0 : i32
    %c0_i32_0 = arith.constant 0 : i32
    %c0_i32_1 = arith.constant 0 : i32
    return %c0_i32, %c0_i32_0 : i32, i32
  }
  func.func @transform_4(%arg0: i32) -> (i32, i32) {
    %c0_i32 = arith.constant 0 : i32
    %c0_i32_0 = arith.constant 0 : i32
    %c0_i32_1 = arith.constant 0 : i32
    return %c0_i32, %c0_i32_0 : i32, i32
  }
  func.func @transform_5(%arg0: i32) -> (i32, i32) {
    %c0_i32 = arith.constant 0 : i32
    %c0_i32_0 = arith.constant 0 : i32
    %c0_i32_1 = arith.constant 0 : i32
    return %c0_i32, %c0_i32_0 : i32, i32
  }
  func.func @transform_6(%arg0: i32) -> (i32, i32) {
    %c0_i32 = arith.constant 0 : i32
    %c0_i32_0 = arith.constant 0 : i32
    %c0_i32_1 = arith.constant 0 : i32
    return %c0_i32, %c0_i32_0 : i32, i32
  }
  func.func @transform_7(%arg0: i32) -> (i32, i32) {
    %c0_i32 = arith.constant 0 : i32
    %c0_i32_0 = arith.constant 0 : i32
    %c0_i32_1 = arith.constant 0 : i32
    return %c0_i32, %c0_i32_0 : i32, i32
  }
  func.func @transform_8(%arg0: i32) -> (i32, i32) {
    %c0_i32 = arith.constant 0 : i32
    %c0_i32_0 = arith.constant 0 : i32
    %c0_i32_1 = arith.constant 0 : i32
    return %c0_i32, %c0_i32_0 : i32, i32
  }
  func.func @transform_9(%arg0: i32) -> (i32, i32) {
    %c0_i32 = arith.constant 0 : i32
    %c0_i32_0 = arith.constant 0 : i32
    %c0_i32_1 = arith.constant 0 : i32
    return %c0_i32, %c0_i32_0 : i32, i32
  }
  func.func @transform_10(%arg0: i32) -> (i32, i32) {
    %c0_i32 = arith.constant 0 : i32
    %c0_i32_0 = arith.constant 0 : i32
    %c0_i32_1 = arith.constant 0 : i32
    return %c0_i32, %c0_i32_0 : i32, i32
  }
  func.func @transform_11(%arg0: i32) -> (i32, i32) {
    %c0_i32 = arith.constant 0 : i32
    %c0_i32_0 = arith.constant 0 : i32
    return %arg0, %c0_i32 : i32, i32
  }
}

</mosaic_0001>

<bundles_post_ra>
// kernel: tpu_custom_call.1
= control target key start
LH: loop header
LB: loop body
LE: loop exit
PB: predicated region body
PF: predicated region fallthrough
CT: control target
= control target key end

     0   :  { %v416_v0 = vmov 0.0   ;;  %vm417_vm0 = vmmov 0   ;;  %vm53_vm1 = vcmask 130048   ;;  %vm195_vm2 = vcmask 523264   ;;  %s533_s3 = inlined_call_operand.vmem [shape: bf16[16,64], index: 3, kind: input, shape index: {}]   ;;  %s534_s2 = inlined_call_operand.vmem [shape: bf16[16,64], index: 2, kind: input, shape index: {}]   ;;  %s535_s1 = inlined_call_operand.vmem [shape: bf16[8,16], index: 1, kind: input, shape index: {}]   ;;  %s536_s0 = inlined_call_operand.vmem [shape: bf16[8,16], index: 0, kind: input, shape index: {}]   ;;  %s537_s5 = inlined_call_operand.vmem [shape: bf16[64,32], index: 5, kind: input, shape index: {}]   ;;  %s538_s7 = inlined_call_operand.vmem [shape: bf16[32,16], index: 7, kind: input, shape index: {}]   ;;  %s539_s4 = inlined_call_operand.vmem [shape: f32[1,64], index: 4, kind: input, shape index: {}]   ;;  %s540_s6 = inlined_call_operand.vmem [shape: f32[1,32], index: 6, kind: input, shape index: {}]   ;;  %s541_s10 = inlined_call_operand.<no memory space> [shape: f32[1,1], index: 10, kind: input, shape index: {}]   ;;  %s542_s8 = inlined_call_operand.vmem [shape: f32[1,16], index: 8, kind: input, shape index: {}]   ;;  %s543_s9 = inlined_call_operand.vmem [shape: f32[1,16], index: 9, kind: input, shape index: {}]   ;;  %s544_s11 = inlined_call_operand.vmem [shape: f32[8,1], index: 11, kind: output, shape index: {}]  }
   0x1   :  { %370 = vmatprep.subr.bf16.mxu0 %v416_v0  ;;  %376 = vmatprep.subr.bf16.mxu1 %v416_v0  ;;  %v404_v1 = vld [vmem:[%s533_s3] sm:$0xff]   ;;  %v407_v6 = vld [vmem:[%s537_s5 + $0x8] sm:$0xff]   ;;  %v408_v7 = vld [vmem:[%s537_s5 + $0x10] sm:$0xff]   ;;  %vm264_vm3 = vcmask 261120   ;;  %v16_v32 = vstv %s541_s10  ;;  %vm334_vm4 = vcmask 7168  }
   0x2   :  { %v405_v2 = vld [vmem:[%s534_s2] sm:$0xff]   ;;  %372 = vmatprep.mubr.msk.bf16.mxu0 %vm417_vm0, %v416_v0  ;;  %378 = vmatprep.mubr.msk.bf16.mxu1 %vm417_vm0, %v416_v0  ;;  %v409_v8 = vld [vmem:[%s537_s5 + $0x18] sm:$0xff]   ;;  %v411_v23 = vld [vmem:[%s538_s7 + $0x8] sm:$0xff]   ;;  %17 = vst [vmem:[#allocation2] sm:$0x1] %v16_v32 }
   0x3   :  { %371 = vmatpush3.bf16.msra.mxu0 %v404_v1  ;;  %v44_v3 = vld [vmem:[%s535_s1] sm:$0xf]  ;;  %377 = vmatpush3.bf16.msra.mxu1 %v405_v2 }
   0x4   :  { %v41_v4 = vld [vmem:[%s536_s0] sm:$0xf]  ;;  %382 = vmatprep.subr.bf16.mxu0 %v416_v0  ;;  %394 = vmatprep.subr.bf16.mxu1 %v416_v0 }
   0x5   :  { %v406_v5 = vld [vmem:[%s537_s5] sm:$0xff]  }
   0x6   :  { %373 = vmatmul.mubr.msk.bf16.vlgmr.msra.gmra.mrb[0].mxu0 %vm53_vm1, %v44_v3  ;;  %379 = vmatmul.mubr.msk.bf16.vlgmr.msra.gmra.mrb[0].mxu1 %vm53_vm1, %v41_v4  ;;  %v410_v9 = vld [vmem:[%s538_s7] sm:$0xff]  }
   0x7   :  { %383 = vmatpush3.bf16.msra.mxu0 %v406_v5  ;;  %390 = vmatprep.mubr.msk.bf16.mxu0 %vm417_vm0, %v416_v0  ;;  %v344_v12 = vld [vmem:[%s539_s4] ss:$0 sm:$0xff] }
   0x8   :  { %384 = vmatprep.subr.bf16.mxu0 %v416_v0  ;;  %398 = vmatprep.mubr.msk.bf16.mxu1 %vm417_vm0, %v416_v0  ;;  %v345_v24 = vld [vmem:[%s540_s6] ss:$0 sm:$0xff] }
   0x9   :  { %395 = vmatpush3.bf16.msra.mxu1 %v410_v9  ;;  %v351_v33 = vld [vmem:[%s542_s8] ss:$0 sm:$0xff] }
   0xa   :  { %396 = vmatprep.subr.bf16.mxu1 %v416_v0  ;;  %v355_v38 = vld [vmem:[%s543_s9] ss:$0 sm:$0xff] }
   0xb   :  { %385 = vmatpush3.bf16.msra.mxu0 %v407_v6  ;;  %v356_v43 = vld [vmem:[#allocation2] ss:$0 sm:$0xff] }
   0xc   :  { %386 = vmatprep.subr.bf16.mxu0 %v416_v0 }
   0xd   :  { %397 = vmatpush3.bf16.msra.mxu1 %v411_v23 }
   0xf   :  { %387 = vmatpush3.bf16.msra.mxu0 %v408_v7 }
  0x10   :  { %388 = vmatprep.subr.bf16.mxu0 %v416_v0 }
  0x13   :  { %389 = vmatpush3.bf16.msra.mxu0 %v409_v8 }
  0xd9   :  { %v91_v10 = vpop.f32.mrb[0].mxu0  ;;  %v140_v11 = vpop.f32.mrb[0].mxu1 }
  0xda   :  { %v374_v13 = vpop.f32.mrb[1].mxu0  ;;  %v141_v14 = vadd.f32 %v140_v11, %v91_v10  ;;  %v380_v15 = vpop.f32.mrb[1].mxu1 }
  0xdb   :  { %v94_v16 = vpop.f32.mrb[2].mxu0  ;;  %v143_v17 = vpop.f32.mrb[2].mxu1 }
  0xdc   :  { %v375_v18 = vpop.f32.mrb[3].mxu0  ;;  %v153_v19 = vadd.f32 %v344_v12, %v141_v14  ;;  %v381_v20 = vpop.f32.mrb[3].mxu1 }
  0xde   :  { %v154_v21 = vmax.f32 %v153_v19, 0.0 }
  0xe0   :  { %v164_v22 = vpack.c.bf16 %v154_v21, %v154_v21 }
  0xe2   :  { %391 = vmatmul.mubr.msk.bf16.vlgmr.msra.gmra.mrb[4].mxu0 %vm195_vm2, %v164_v22 }
 0x1b5   :  { %v233_v25 = vpop.f32.mrb[4].mxu0 }
 0x1b6   :  { %v234_v26 = vadd.f32 %v345_v24, %v233_v25  ;;  %v392_v27 = vpop.f32.mrb[5].mxu0 }
 0x1b7   :  { %v236_v28 = vpop.f32.mrb[6].mxu0 }
 0x1b8   :  { %v239_v29 = vmax.f32 %v234_v26, 0.0  ;;  %v393_v30 = vpop.f32.mrb[7].mxu0 }
 0x1ba   :  { %v245_v31 = vpack.c.bf16 %v239_v29, %v239_v29 }
 0x1bc   :  { %399 = vmatmul.mubr.msk.bf16.vlgmr.msra.gmra.mrb[4].mxu1 %vm264_vm3, %v245_v31 }
 0x28f   :  { %v302_v34 = vpop.f32.mrb[4].mxu1 }
 0x290   :  { %v303_v35 = vadd.f32 %v351_v33, %v302_v34  ;;  %v400_v36 = vpop.f32.mrb[5].mxu1 }
 0x291   :  { %v305_v37 = vpop.f32.mrb[6].mxu1 }
 0x292   :  { %v308_v39 = vmax.f32 %v303_v35, 0.0  ;;  %v401_v40 = vpop.f32.mrb[7].mxu1 }
 0x294   :  { %v317_v41 = vmul.f32 %v355_v38, %v308_v39 }
 0x296   :  { %v318_v42 = vsel %vm53_vm1, %v317_v41, 0.0 }
 0x297   :  { %319 = vadd.xlane.f32.xlu0 %v318_v42 }
 0x324   :  { %v320_v44 = vpop.xlane.xlu0 %319 }
 0x325   :  { %v327_v45 = vadd.f32 %v356_v43, %v320_v44 }
 0x327   :  { %v357_v46 = vmul.f32 -1.442695, %v327_v45 }
 0x329   :  { %412 = vpow2.f32 %v357_v46 }
 0x333   :  { %v413_v47 = vpop.eup %412 }
 0x334   :  { %v331_v48 = vadd.f32 1.0, %v413_v47 }
 0x336   :  { %414 = vrcp.f32 %v331_v48 }
 0x340   :  { %v415_v49 = vpop.eup %414 }
 0x341   :  { %335 = vst.msk [vmem:[%s544_s11] sm:$0xff] %vm334_vm4, %v415_v49 }

</bundles_post_ra>
